<compile_context>
chip_gen: v7x
topology: tpu7x:2x2x1
jax: 0.10.0
libtpu: 0.0.40
codegen_flags: <defaults>
</compile_context>

<pallas_src>
import jax
import jax.numpy as jnp
from jax.experimental import pallas as pl
from jax.experimental.pallas import tpu as pltpu


def _round_up(x, m):
    return (x + m - 1) // m * m


_VMEM = pl.BlockSpec(memory_space=pltpu.MemorySpace.VMEM)


# ---------------------------------------------------------------------------
# Kernel 1: once-per-source-sequence encoder projection  enc_proj = enc @ W_ae
# ---------------------------------------------------------------------------
def enc_proj_kernel(enc_ref, wa_e_ref, out_ref):
    out_ref[...] = jnp.dot(enc_ref[...], wa_e_ref[...],
                           preferred_element_type=jnp.float32)


# ---------------------------------------------------------------------------
# Kernel 2: per-step attention + GRU cell
# ---------------------------------------------------------------------------
def attn_gru_kernel(xe_ref, h_ref, enc_ref, encp_ref,
                    whf_ref, ba_ref, v_ref,
                    wih_e_ref, wih_c_ref, bih_ref, bhh_ref,
                    hnew_ref, hc_ref):
    B, S, H = encp_ref.shape
    bf16 = jnp.bfloat16
    h = h_ref[...]                                                     # (B, H) f32

    # Independent work first: input-side GRU pre-activations from the embedding.
    gi_x = jnp.dot(xe_ref[...], wih_e_ref[...],
                   preferred_element_type=jnp.float32) + bih_ref[...]   # (B, 3H)

    # One fused MXU matmul for everything that consumes the previous hidden state:
    #   h @ [W_attn_hid | W_hh]  ->  (B, H + 3H)
    hf = jnp.dot(h.astype(bf16), whf_ref[...],
                 preferred_element_type=jnp.float32)                    # (B, 4H)
    h_proj = hf[:, :H]                                                  # (B, H)
    gh = hf[:, H:] + bhh_ref[...]                                       # (B, 3H)

    # ---- Bahdanau attention (enc @ W_attn_enc precomputed per sequence) ----
    energy = jnp.tanh(h_proj[:, None, :] + encp_ref[...] + ba_ref[...][None])  # (B,S,H)
    # scores via an MXU batched contraction (q=1 "query" = v), not an XLU reduction
    v_q = jnp.broadcast_to(v_ref[...][None], (B, 1, H))                 # (B,1,H) bf16
    scores = jnp.einsum("bqh,bsh->bqs", v_q, energy.astype(bf16),
                        preferred_element_type=jnp.float32)             # (B,1,S)
    m = jnp.max(scores, axis=-1, keepdims=True)
    e = jnp.exp(scores - m)
    a = e * pl.reciprocal(jnp.sum(e, axis=-1, keepdims=True), approx=True)
    # context via an MXU batched contraction
    c = jnp.einsum("bqs,bsh->bqh", a.astype(bf16), enc_ref[...],
                   preferred_element_type=jnp.float32)[:, 0, :]         # (B, H) f32

    # ---- GRU cell, PyTorch gate order (r, z, n) ----
    gi = gi_x + jnp.dot(c.astype(bf16), wih_c_ref[...],
                        preferred_element_type=jnp.float32)             # (B, 3H)
    r = jax.nn.sigmoid(gi[:, :H] + gh[:, :H])
    z = jax.nn.sigmoid(gi[:, H:2 * H] + gh[:, H:2 * H])
    n = jnp.tanh(gi[:, 2 * H:] + r * gh[:, 2 * H:])
    h_new = (1.0 - z) * n + z * h                                       # (B, H)

    hnew_ref[...] = h_new
    # fc input [h_new ; c] in bf16 for the gridded vocab-projection kernel.
    hc_ref[:, :H] = h_new.astype(bf16)
    hc_ref[:, H:] = c.astype(bf16)


# ---------------------------------------------------------------------------
# Kernel 3: vocab projection  out = [h_new ; c] @ W_fc + b_fc, gridded over O
# ---------------------------------------------------------------------------
def fc_kernel(hc_ref, wfc_ref, bfc_ref, out_ref):
    out_ref[...] = (jnp.dot(hc_ref[...], wfc_ref[...],
                            preferred_element_type=jnp.float32)
                    + bfc_ref[...]).astype(out_ref.dtype)


# ---------------------------------------------------------------------------
# Wrappers
# ---------------------------------------------------------------------------
def precompute_encoder(dp, enc_outs):
    """Once per source sequence: pad batch to 8 sublanes, cast to bf16, project."""
    B, S, H = enc_outs.shape
    B_pad = _round_up(B, 8)
    enc = jnp.pad(enc_outs.astype(jnp.bfloat16), ((0, B_pad - B), (0, 0), (0, 0)))
    enc_flat = enc.reshape(B_pad * S, H)          # free metadata reshape in the wrapper
    enc_proj_flat = pl.pallas_call(
        enc_proj_kernel,
        out_shape=jax.ShapeDtypeStruct((B_pad * S, H), jnp.float32),
        in_specs=[_VMEM, _VMEM],
        out_specs=_VMEM,
    )(enc_flat, dp["wa_e"])
    return {"enc": enc, "enc_proj": enc_proj_flat.reshape(B_pad, S, H)}


def decoder_step(dp, x_tok, hidden, enc_cache):
    """One decode step: x_tok (B,) int32, hidden (1,B,H) -> (out (B,O), hidden (1,B,H))."""
    enc, encp = enc_cache["enc"], enc_cache["enc_proj"]
    B = x_tok.shape[0]
    B_pad, S, H = enc.shape
    O, TN = dp["O"], dp["TN"]
    O_pad = dp["wfc"].shape[1]

    # Embedding lookup: tiny gather, kept as JAX glue feeding the Pallas hot path.
    xe = jnp.pad(dp["emb"][x_tok], ((0, B_pad - B), (0, 0)))             # (B_pad, E) bf16
    h0 = jnp.pad(hidden[0], ((0, B_pad - B), (0, 0)))                    # (B_pad, H) f32

    h_new, hc = pl.pallas_call(
        attn_gru_kernel,
        out_shape=(jax.ShapeDtypeStruct((B_pad, H), jnp.float32),
                   jax.ShapeDtypeStruct((B_pad, 2 * H), jnp.bfloat16)),
        in_specs=[_VMEM] * 11,
        out_specs=(_VMEM, _VMEM),
    )(xe, h0, enc, encp,
      dp["w_hfused"], dp["ba"], dp["v"],
      dp["wih_e"], dp["wih_c"], dp["bih"], dp["bhh"])

    n_tiles = O_pad // TN
    out_pad = pl.pallas_call(
        fc_kernel,
        out_shape=jax.ShapeDtypeStruct((B_pad, O_pad), jnp.float32),
        grid=(n_tiles,),
        in_specs=[pl.BlockSpec((B_pad, 2 * H), lambda j: (0, 0)),
                  pl.BlockSpec((2 * H, TN), lambda j: (0, j)),
                  pl.BlockSpec((1, TN), lambda j: (0, j))],
        out_specs=pl.BlockSpec((B_pad, TN), lambda j: (0, j)),
        compiler_params=pltpu.CompilerParams(
            dimension_semantics=("parallel",),
            vmem_limit_bytes=32 * 1024 * 1024),
        cost_estimate=pl.CostEstimate(
            flops=2 * B_pad * 2 * H * O_pad,
            transcendentals=0,
            bytes_accessed=(B_pad * 2 * H * 2 + 2 * H * O_pad * 2
                            + O_pad * 4 + B_pad * O_pad * 4)),
    )(hc, dp["wfc"], dp["bfc"])

    return out_pad[:B, :O], h_new[:B][None]        # hidden back to (1, B, H)


# ---------------------------------------------------------------------------
# Parameters
# ---------------------------------------------------------------------------
def init_params(key, output_dim, emb_dim, hid_dim):
    """Canonical f32 parameters (weights pre-transposed to (in, out)). Matmul weights
    are rounded through bf16 so the pure-JAX reference and the bf16 Pallas kernels
    share numerically identical weights."""
    ks = jax.random.split(key, 13)
    s = 0.1
    rnd = lambda x: x.astype(jnp.bfloat16).astype(jnp.float32)
    return {
        "emb":   rnd(jax.random.normal(ks[0], (output_dim, emb_dim), jnp.float32) * s),
        # attention: Linear(2H -> H) split into hidden/enc halves, plus v: Linear(H -> 1)
        "wa_h":  rnd(jax.random.normal(ks[1], (hid_dim, hid_dim), jnp.float32) * s),
        "wa_e":  rnd(jax.random.normal(ks[2], (hid_dim, hid_dim), jnp.float32) * s),
        "ba":    jax.random.normal(ks[3], (1, hid_dim), jnp.float32) * s,
        "v":     rnd(jax.random.normal(ks[4], (1, hid_dim), jnp.float32) * s),
        # GRU: weight_ih (E+H -> 3H) split into emb / context halves, weight_hh (H -> 3H)
        "wih_e": rnd(jax.random.normal(ks[5], (emb_dim, 3 * hid_dim), jnp.float32) * s),
        "wih_c": rnd(jax.random.normal(ks[6], (hid_dim, 3 * hid_dim), jnp.float32) * s),
        "bih":   jax.random.normal(ks[7], (1, 3 * hid_dim), jnp.float32) * s,
        "whh":   rnd(jax.random.normal(ks[8], (hid_dim, 3 * hid_dim), jnp.float32) * s),
        "bhh":   jax.random.normal(ks[9], (1, 3 * hid_dim), jnp.float32) * s,
        # fc: Linear(2H -> output_dim) split into output / context halves
        "wfc_h": rnd(jax.random.normal(ks[10], (hid_dim, output_dim), jnp.float32) * s),
        "wfc_c": rnd(jax.random.normal(ks[11], (hid_dim, output_dim), jnp.float32) * s),
        "bfc":   jax.random.normal(ks[12], (1, output_dim), jnp.float32) * s,
    }


def prepare_params(p):
    """Kernel-ready params: bf16 matmul weights, h-side weights fused into (H, 4H),
    fc weights fused into (2H, O) and zero-padded to a lane-dense 128-multiple tile."""
    bf = lambda w: w.astype(jnp.bfloat16)
    O = p["wfc_h"].shape[1]
    TN = min(1024, _round_up(O, 128))            # vocab tile (lane-dense, 128-multiple)
    O_pad = _round_up(O, TN)
    wfc = jnp.concatenate([p["wfc_h"], p["wfc_c"]], axis=0)   # (2H, O)
    return {
        "emb": bf(p["emb"]),
        "wa_e": bf(p["wa_e"]),
        "w_hfused": bf(jnp.concatenate([p["wa_h"], p["whh"]], axis=1)),   # (H, H + 3H)
        "ba": p["ba"],
        "v": bf(p["v"]),
        "wih_e": bf(p["wih_e"]),
        "wih_c": bf(p["wih_c"]),
        "bih": p["bih"],
        "bhh": p["bhh"],
        "wfc": bf(jnp.pad(wfc, ((0, 0), (0, O_pad - O)))),
        "bfc": jnp.pad(p["bfc"], ((0, 0), (0, O_pad - O))),
        "O": O,
        "TN": TN,
    }


# ---------------------------------------------------------------------------
# Pure-JAX reference (PyTorch forward semantics, f32 throughout)
# ---------------------------------------------------------------------------
def decoder_reference(params, x_tok, hidden, enc_outs):
    xe = params["emb"][x_tok]              # (B, E)
    h = hidden[0]                          # (B, H)
    B, S, H = enc_outs.shape

    h_proj = h @ params["wa_h"]
    enc_proj = jnp.einsum("bsh,hk->bsk", enc_outs, params["wa_e"])
    energy = jnp.tanh(h_proj[:, None, :] + enc_proj + params["ba"][None])
    scores = jnp.sum(energy * params["v"][None], axis=-1)
    a = jax.nn.softmax(scores, axis=-1)
    c = jnp.einsum("bs,bsh->bh", a, enc_outs)

    gi = xe @ params["wih_e"] + c @ params["wih_c"] + params["bih"]
    gh = h @ params["whh"] + params["bhh"]
    i_r, i_z, i_n = gi[:, :H], gi[:, H:2 * H], gi[:, 2 * H:]
    h_r, h_z, h_n = gh[:, :H], gh[:, H:2 * H], gh[:, 2 * H:]
    r = jax.nn.sigmoid(i_r + h_r)
    z = jax.nn.sigmoid(i_z + h_z)
    n = jnp.tanh(i_n + r * h_n)
    h_new = (1.0 - z) * n + z * h

    out = h_new @ params["wfc_h"] + c @ params["wfc_c"] + params["bfc"]
    return out, h_new[None]


if __name__ == "__main__":
    OUTPUT_DIM, EMB_DIM, HID_DIM = 32, 16, 32
    BATCH, SRC_LEN = 4, 8

    key = jax.random.PRNGKey(0)
    kp, kx, kh, ke = jax.random.split(key, 4)

    params = init_params(kp, OUTPUT_DIM, EMB_DIM, HID_DIM)
    dev_params = prepare_params(params)

    x_tok = jax.random.randint(kx, (BATCH,), 0, OUTPUT_DIM, dtype=jnp.int32)
    hidden = jax.random.normal(kh, (1, BATCH, HID_DIM), jnp.float32)
    enc_outs = jax.random.normal(ke, (BATCH, SRC_LEN, HID_DIM), jnp.float32)

    # Once per source sequence (decode-step invariant), then one decode step.
    enc_cache = precompute_encoder(dev_params, enc_outs)
    out, h_new = jax.block_until_ready(decoder_step(dev_params, x_tok, hidden, enc_cache))

    out_exp, hid_exp = decoder_reference(params, x_tok, hidden, enc_outs)

    assert out.shape == (BATCH, OUTPUT_DIM) and h_new.shape == (1, BATCH, HID_DIM)
    assert jnp.allclose(out, out_exp, rtol=2e-2, atol=2e-2), \
        float(jnp.max(jnp.abs(out - out_exp)))
    assert jnp.allclose(h_new, hid_exp, rtol=2e-2, atol=2e-2), \
        float(jnp.max(jnp.abs(h_new - hid_exp)))
    print("KERNEL_OK")
</pallas_src>

<mosaic_0001>
module attributes {stable_mosaic.version = 11 : i64} {
  func.func @enc_proj_kernel(%arg0: memref<64x32xbf16, #tpu.memory_space<vmem>>, %arg1: memref<32x32xbf16, #tpu.memory_space<vmem>>, %arg2: memref<64x32xf32, #tpu.memory_space<vmem>>) attributes {dimension_semantics = [], scalar_prefetch = 0 : i64, scratch_operands = 0 : i64, tpu.core_type = #tpu.core_type<tc>} {
    %c0 = arith.constant 0 : index
    %c0_0 = arith.constant 0 : index
    %0 = vector.load %arg0[%c0, %c0_0] : memref<64x32xbf16, #tpu.memory_space<vmem>>, vector<64x32xbf16>
    %c0_1 = arith.constant 0 : index
    %c0_2 = arith.constant 0 : index
    %1 = vector.load %arg1[%c0_1, %c0_2] : memref<32x32xbf16, #tpu.memory_space<vmem>>, vector<32x32xbf16>
    %cst = arith.constant dense<0.000000e+00> : vector<64x32xf32>
    %2 = tpu.matmul %0, %1, %cst {dimension_numbers = #tpu.dot_dimension_numbers<[1], [0], [0], [1], [0, 0, 1, 1], [], []>} : vector<64x32xbf16>, vector<32x32xbf16>, vector<64x32xf32> -> vector<64x32xf32>
    %c0_3 = arith.constant 0 : index
    %c0_4 = arith.constant 0 : index
    %3 = vector.load %arg2[%c0_3, %c0_4] : memref<64x32xf32, #tpu.memory_space<vmem>>, vector<64x32xf32>
    tpu.vector_store %arg2[%c0_3, %c0_4], %2 {strides = array<i32>} : memref<64x32xf32, #tpu.memory_space<vmem>>, vector<64x32xf32>,
    return
  }
}

</mosaic_0001>

<bundles_post_ra>
// kernel: tpu_custom_call.1
= control target key start
LH: loop header
LB: loop body
LE: loop exit
PB: predicated region body
PF: predicated region fallthrough
CT: control target
= control target key end

     0   :  { %vm56_vm0 = vcmask 261120   ;;  %s253_s1 = inlined_call_operand.vmem [shape: bf16[32,32], index: 1, kind: input, shape index: {}]   ;;  %s254_s0 = inlined_call_operand.vmem [shape: bf16[64,32], index: 0, kind: input, shape index: {}]   ;;  %s255_s2 = inlined_call_operand.vmem [shape: f32[64,32], index: 2, kind: output, shape index: {}]  }
   0x1   :  { %v178_v0 = vld [vmem:[%s253_s1] sm:$0xff]   ;;  %v179_v1 = vld [vmem:[%s253_s1 + $0x8] sm:$0xff]   ;;  %v181_v3 = vld [vmem:[%s254_s0 + $0x10] sm:$0xff]  }
   0x2   :  { %162 = vmatprep.subr.bf16.mxu0 %v178_v0  ;;  %174 = vmatprep.subr.bf16.mxu1 %v178_v0  ;;  %v180_v2 = vld [vmem:[%s254_s0] sm:$0xff]   ;;  %v182_v4 = vld [vmem:[%s254_s0 + $0x8] sm:$0xff]   ;;  %v183_v5 = vld [vmem:[%s254_s0 + $0x18] sm:$0xff]  }
   0x3   :  { %163 = vmatpush3.bf16.msra.mxu0 %v178_v0  ;;  %176 = vmatpush3.bf16.msra.mxu1 %v178_v0 }
   0x4   :  { %164 = vmatprep.subr.bf16.mxu0 %v179_v1  ;;  %175 = vmatprep.subr.bf16.mxu1 %v179_v1 }
   0x5   :  { %166 = vmatprep.mubr.msk.bf16.mxu0 %vm56_vm0, %v180_v2  ;;  %170 = vmatprep.mubr.msk.bf16.mxu1 %vm56_vm0, %v181_v3 }
   0x7   :  { %165 = vmatpush3.bf16.msra.mxu0 %v179_v1  ;;  %177 = vmatpush3.bf16.msra.mxu1 %v179_v1 }
   0xa   :  { %167 = vmatmul.mubr.msk.bf16.vlgmr.msra.gmra.mrb[0].mxu0 %vm56_vm0, %v182_v4  ;;  %171 = vmatmul.mubr.msk.bf16.vlgmr.msra.gmra.mrb[0].mxu1 %vm56_vm0, %v183_v5 }
  0xdd   :  { %v168_v6 = vpop.f32.mrb[0].mxu0  ;;  %v172_v7 = vpop.f32.mrb[0].mxu1 }
  0xde   :  { %136 = vst.msk [vmem:[%s255_s2 + $0x10] sm:$0xff] %vm56_vm0, %v168_v6  ;;  %140 = vst.msk [vmem:[%s255_s2 + $0x30] sm:$0xff] %vm56_vm0, %v172_v7  ;;  %v103_v8 = vpop.f32.mrb[1].mxu0  ;;  %v119_v9 = vpop.f32.mrb[1].mxu1 }
  0xdf   :  { %134 = vst.msk [vmem:[%s255_s2] sm:$0xff] %vm56_vm0, %v103_v8  ;;  %138 = vst.msk [vmem:[%s255_s2 + $0x20] sm:$0xff] %vm56_vm0, %v119_v9  ;;  %v169_v10 = vpop.f32.mrb[2].mxu0  ;;  %v173_v11 = vpop.f32.mrb[2].mxu1 }
  0xe0   :  { %137 = vst.msk [vmem:[%s255_s2 + $0x18] sm:$0xff] %vm56_vm0, %v169_v10  ;;  %141 = vst.msk [vmem:[%s255_s2 + $0x38] sm:$0xff] %vm56_vm0, %v173_v11  ;;  %v106_v12 = vpop.f32.mrb[3].mxu0  ;;  %v122_v13 = vpop.f32.mrb[3].mxu1 }
  0xe1   :  { %135 = vst.msk [vmem:[%s255_s2 + $0x8] sm:$0xff] %vm56_vm0, %v106_v12  ;;  %139 = vst.msk [vmem:[%s255_s2 + $0x28] sm:$0xff] %vm56_vm0, %v122_v13 }

</bundles_post_ra>
